<compile_context>
chip_gen: v7x
topology: tpu7x:2x2x1
jax: 0.10.0
libtpu: 0.0.40
codegen_flags: <defaults>
</compile_context>

<pallas_src>
import functools

import jax
import jax.numpy as jnp
from jax.experimental import pallas as pl
from jax.experimental.pallas import tpu as pltpu


def _round_up(x, m):
    return ((x + m - 1) // m) * m


def _ffn_kernel(x_ref, w1_ref, b1_ref, w2_ref, b2_ref, o_ref, acc_ref, *, bf16_tanh):
    # x:  (tm, C)    w1: (C, th)   b1: (1, th)
    # w2: (th, C)    b2: (1, C)    o:  (tm, C)   acc: (tm, C) f32 scratch
    h_idx = pl.program_id(1)

    @pl.when(h_idx == 0)
    def _init():
        acc_ref[...] = jnp.zeros_like(acc_ref)

    # Cast to bf16 in-kernel (VPU); no-op if the caller already stores bf16.
    x = x_ref[...].astype(jnp.bfloat16)
    w1 = w1_ref[...].astype(jnp.bfloat16)
    h = jnp.dot(x, w1, preferred_element_type=jnp.float32)      # MXU, f32 acc
    h = h + b1_ref[...].astype(jnp.float32)

    if bf16_tanh:
        # v6e / v7x: EUP has a bf16 path; result is already the MXU input dtype.
        a = jnp.tanh(h.astype(jnp.bfloat16))
    else:
        # v5e: no bf16 VPU/EUP path; f32 tanh hides under MXU time.
        a = jnp.tanh(h).astype(jnp.bfloat16)

    w2 = w2_ref[...].astype(jnp.bfloat16)
    acc_ref[...] += jnp.dot(a, w2, preferred_element_type=jnp.float32)  # MXU

    @pl.when(h_idx == pl.num_programs(1) - 1)
    def _finalize():
        o_ref[...] = (acc_ref[...] + b2_ref[...].astype(jnp.float32)).astype(o_ref.dtype)


def _pick_m_tile(M, target):
    """Layout-friendly row tile: multiple of 16 (128 when tiled) with low pad waste."""
    if M <= target:
        return _round_up(M, 16)
    cand = max(128, (target // 128) * 128)
    while cand >= 128:
        if _round_up(M, cand) - M <= M // 8:   # <= 12.5% padding waste
            return cand
        cand -= 128
    return 128


def _pick_h_tile(H, target):
    """Hidden-dim tile: multiple of 128 that divides H, else the full H."""
    if H <= target or H % 128 != 0:
        return H
    cand = max(128, (target // 128) * 128)
    while cand >= 128:
        if H % cand == 0:
            return cand
        cand -= 128
    return H


def _vmem_limit_bytes():
    """~75% of this generation's physical VMEM (96 MiB v5e/v6e, 48 MiB v7x)."""
    try:
        cap = int(pltpu.get_tpu_info().vmem_capacity_bytes)
        if cap > 0:
            return (cap * 3) // 4
    except Exception:
        pass
    return 64 << 20


def _use_bf16_tanh():
    """bf16 tanh only on generations with a bf16 EUP path (v6e / v7x)."""
    try:
        kind = jax.devices()[0].device_kind.lower()
    except Exception:
        return False
    if any(old in kind for old in ("v2", "v3", "v4", "v5")):
        return False
    return ("v6" in kind) or ("v7" in kind) or ("7x" in kind)


def feed_forward(x, w1, b1, w2, b2, *, tm_target=256, th_target=512, out_dtype=None):
    """Fused nanoGPT FeedForward: y = tanh(x @ w1 + b1) @ w2 + b2 (dropout = eval mode).

    x: (B, T, C).  w1: (C, 4C), b1: (4C,) or (1, 4C), w2: (4C, C), b2: (C,) or (1, C).
    Weights may be f32 or bf16 (store bf16 persistently to halve weight DMA bytes);
    both matmuls run bf16-input / f32-accumulate on the MXU either way.
    """
    B, T, C = x.shape
    H = w1.shape[1]
    M = B * T
    out_dtype = out_dtype or x.dtype

    b1 = b1.reshape(1, H)
    b2 = b2.reshape(1, C)

    tm = _pick_m_tile(M, tm_target)
    th = _pick_h_tile(H, th_target)
    m_pad = _round_up(M, tm)

    x2 = x.reshape(M, C)
    if m_pad != M:
        # Padded rows compute tanh(b1) @ w2 + b2 (garbage) and are sliced off below.
        x2 = jnp.pad(x2, ((0, m_pad - M), (0, 0)))

    m_tiles = m_pad // tm
    h_tiles = H // th

    cost = pl.CostEstimate(
        flops=2 * m_pad * (C * H + H * C),
        transcendentals=m_pad * H,
        bytes_accessed=(
            x2.size * x2.dtype.itemsize
            + m_tiles * (w1.size * w1.dtype.itemsize
                         + w2.size * w2.dtype.itemsize
                         + b1.size * b1.dtype.itemsize)
            + b2.size * b2.dtype.itemsize
            + m_pad * C * jnp.dtype(out_dtype).itemsize),
    )

    kernel = functools.partial(_ffn_kernel, bf16_tanh=_use_bf16_tanh())

    out = pl.pallas_call(
        kernel,
        out_shape=jax.ShapeDtypeStruct((m_pad, C), out_dtype),
        grid_spec=pltpu.PrefetchScalarGridSpec(
            num_scalar_prefetch=0,
            grid=(m_tiles, h_tiles),                          # reduction (H) axis last
            in_specs=[
                pl.BlockSpec((tm, C), lambda i, h: (i, 0)),   # x tile, resident over h
                pl.BlockSpec((C, th), lambda i, h: (0, h)),   # w1 column slab
                pl.BlockSpec((1, th), lambda i, h: (0, h)),   # b1 slab
                pl.BlockSpec((th, C), lambda i, h: (h, 0)),   # w2 row slab
                pl.BlockSpec((1, C), lambda i, h: (0, 0)),    # b2 (constant, tiny)
            ],
            out_specs=pl.BlockSpec((tm, C), lambda i, h: (i, 0)),
            scratch_shapes=[pltpu.VMEM((tm, C), jnp.float32)],
        ),
        compiler_params=pltpu.CompilerParams(
            dimension_semantics=("parallel", "arbitrary"),    # shard M across TCs on v7x
            vmem_limit_bytes=_vmem_limit_bytes(),
        ),
        cost_estimate=cost,
    )(x2, w1, b1, w2, b2)

    if m_pad != M:
        out = out[:M]
    return out.reshape(B, T, C)


if __name__ == "__main__":
    # Small, module-consistent shapes: batch=2, seq=8, n_embd=32, hidden=128.
    B, T, C = 2, 8, 32
    H = 4 * C

    key = jax.random.PRNGKey(0)
    kx, k1, k2, k3, k4 = jax.random.split(key, 5)

    x = jax.random.normal(kx, (B, T, C), dtype=jnp.float32)
    # Deterministic parameter init (PyTorch-Linear-like uniform bound 1/sqrt(in)).
    w1 = jax.random.uniform(k1, (C, H), jnp.float32, -1.0, 1.0) / jnp.sqrt(C)
    b1 = jax.random.uniform(k2, (H,), jnp.float32, -1.0, 1.0) / jnp.sqrt(C)
    w2 = jax.random.uniform(k3, (H, C), jnp.float32, -1.0, 1.0) / jnp.sqrt(H)
    b2 = jax.random.uniform(k4, (C,), jnp.float32, -1.0, 1.0) / jnp.sqrt(H)

    y = feed_forward(x, w1, b1, w2, b2)
    jax.block_until_ready(y)

    # Reference check in plain JAX (f32). Kernel uses bf16 matmul/tanh inputs
    # with f32 accumulation, so tolerance is loosened accordingly.
    ref = jnp.tanh(x.reshape(-1, C) @ w1 + b1[None, :]) @ w2 + b2[None, :]
    assert jnp.allclose(y.reshape(-1, C), ref, atol=3e-2, rtol=3e-2), "mismatch"

    print("KERNEL_OK")
</pallas_src>

<mosaic_0001>
module attributes {stable_mosaic.version = 11 : i64} {
  func.func @_ffn_kernel(%arg0: i32, %arg1: i32, %arg2: memref<16x32xf32, #tpu.memory_space<vmem>>, %arg3: memref<32x128xf32, #tpu.memory_space<vmem>>, %arg4: memref<1x128xf32, #tpu.memory_space<vmem>>, %arg5: memref<128x32xf32, #tpu.memory_space<vmem>>, %arg6: memref<1x32xf32, #tpu.memory_space<vmem>>, %arg7: memref<16x32xf32, #tpu.memory_space<vmem>>, %arg8: memref<16x32xf32, #tpu.memory_space<vmem>>) attributes {dimension_semantics = [#tpu.dimension_semantics<parallel>, #tpu.dimension_semantics<arbitrary>], iteration_bounds = array<i64: 1, 1>, scalar_prefetch = 0 : i64, scratch_operands = 1 : i64, tpu.core_type = #tpu.core_type<tc>, window_params = [{transform_indices = @transform_0, window_bounds = array<i64: 16, 32>}, {transform_indices = @transform_1, window_bounds = array<i64: 32, 128>}, {transform_indices = @transform_2, window_bounds = array<i64: 1, 128>}, {transform_indices = @transform_3, window_bounds = array<i64: 128, 32>}, {pipeline_mode = #tpu.pipeline_mode<synchronous>, transform_indices = @transform_4, window_bounds = array<i64: 1, 32>}, {transform_indices = @transform_5, window_bounds = array<i64: 16, 32>}]} {
    %c0_i32 = arith.constant 0 : i32
    %0 = arith.cmpi eq, %arg1, %c0_i32 : i32
    %1 = arith.extui %0 : i1 to i32
    %c0_i32_0 = arith.constant 0 : i32
    %2 = arith.cmpi ne, %1, %c0_i32_0 : i32
    scf.if %2 {
      %cst_15 = arith.constant 0.000000e+00 : f32
      %22 = vector.broadcast %cst_15 : f32 to vector<16x32xf32>
      %c0_16 = arith.constant 0 : index
      %c0_17 = arith.constant 0 : index
      %23 = vector.load %arg8[%c0_16, %c0_17] : memref<16x32xf32, #tpu.memory_space<vmem>>, vector<16x32xf32>
      tpu.vector_store %arg8[%c0_16, %c0_17], %22 {strides = array<i32>} : memref<16x32xf32, #tpu.memory_space<vmem>>, vector<16x32xf32>,
    } else {
    }
    %c0 = arith.constant 0 : index
    %c0_1 = arith.constant 0 : index
    %3 = vector.load %arg2[%c0, %c0_1] : memref<16x32xf32, #tpu.memory_space<vmem>>, vector<16x32xf32>
    %4 = arith.truncf %3 : vector<16x32xf32> to vector<16x32xbf16>
    %c0_2 = arith.constant 0 : index
    %c0_3 = arith.constant 0 : index
    %5 = vector.load %arg3[%c0_2, %c0_3] : memref<32x128xf32, #tpu.memory_space<vmem>>, vector<32x128xf32>
    %6 = arith.truncf %5 : vector<32x128xf32> to vector<32x128xbf16>
    %cst = arith.constant dense<0.000000e+00> : vector<16x128xf32>
    %7 = tpu.matmul %4, %6, %cst {dimension_numbers = #tpu.dot_dimension_numbers<[1], [0], [0], [1], [0, 0, 1, 1], [], []>} : vector<16x32xbf16>, vector<32x128xbf16>, vector<16x128xf32> -> vector<16x128xf32>
    %c0_4 = arith.constant 0 : index
    %c0_5 = arith.constant 0 : index
    %8 = vector.load %arg4[%c0_4, %c0_5] : memref<1x128xf32, #tpu.memory_space<vmem>>, vector<1x128xf32>
    %9 = vector.broadcast %8 : vector<1x128xf32> to vector<16x128xf32>
    %10 = arith.addf %7, %9 : vector<16x128xf32>
    %11 = math.tanh %10 : vector<16x128xf32>
    %12 = arith.truncf %11 : vector<16x128xf32> to vector<16x128xbf16>
    %c0_6 = arith.constant 0 : index
    %c0_7 = arith.constant 0 : index
    %13 = vector.load %arg5[%c0_6, %c0_7] : memref<128x32xf32, #tpu.memory_space<vmem>>, vector<128x32xf32>
    %14 = arith.truncf %13 : vector<128x32xf32> to vector<128x32xbf16>
    %c0_8 = arith.constant 0 : index
    %c0_9 = arith.constant 0 : index
    %15 = vector.load %arg8[%c0_8, %c0_9] : memref<16x32xf32, #tpu.memory_space<vmem>>, vector<16x32xf32>
    %cst_10 = arith.constant dense<0.000000e+00> : vector<16x32xf32>
    %16 = tpu.matmul %12, %14, %cst_10 {dimension_numbers = #tpu.dot_dimension_numbers<[1], [0], [0], [1], [0, 0, 1, 1], [], []>} : vector<16x128xbf16>, vector<128x32xbf16>, vector<16x32xf32> -> vector<16x32xf32>
    %17 = arith.addf %15, %16 : vector<16x32xf32>
    %c0_11 = arith.constant 0 : index
    %c0_12 = arith.constant 0 : index
    %18 = vector.load %arg8[%c0_11, %c0_12] : memref<16x32xf32, #tpu.memory_space<vmem>>, vector<16x32xf32>
    tpu.vector_store %arg8[%c0_11, %c0_12], %17 {strides = array<i32>} : memref<16x32xf32, #tpu.memory_space<vmem>>, vector<16x32xf32>,
    %c0_i32_13 = arith.constant 0 : i32
    %19 = arith.cmpi eq, %arg1, %c0_i32_13 : i32
    %20 = arith.extui %19 : i1 to i32
    %c0_i32_14 = arith.constant 0 : i32
    %21 = arith.cmpi ne, %20, %c0_i32_14 : i32
    scf.if %21 {
      %c0_15 = arith.constant 0 : index
      %c0_16 = arith.constant 0 : index
      %22 = vector.load %arg8[%c0_15, %c0_16] : memref<16x32xf32, #tpu.memory_space<vmem>>, vector<16x32xf32>
      %c0_17 = arith.constant 0 : index
      %c0_18 = arith.constant 0 : index
      %23 = vector.load %arg6[%c0_17, %c0_18] : memref<1x32xf32, #tpu.memory_space<vmem>>, vector<1x32xf32>
      %24 = vector.broadcast %23 : vector<1x32xf32> to vector<16x32xf32>
      %25 = arith.addf %22, %24 : vector<16x32xf32>
      %c0_19 = arith.constant 0 : index
      %c0_20 = arith.constant 0 : index
      %26 = vector.load %arg7[%c0_19, %c0_20] : memref<16x32xf32, #tpu.memory_space<vmem>>, vector<16x32xf32>
      tpu.vector_store %arg7[%c0_19, %c0_20], %25 {strides = array<i32>} : memref<16x32xf32, #tpu.memory_space<vmem>>, vector<16x32xf32>,
    } else {
    }
    return
  }
  func.func @transform_0(%arg0: i32, %arg1: i32) -> (i32, i32) {
    %c0_i32 = arith.constant 0 : i32
    %c0_i32_0 = arith.constant 0 : i32
    return %arg0, %c0_i32 : i32, i32
  }
  func.func @transform_1(%arg0: i32, %arg1: i32) -> (i32, i32) {
    %c0_i32 = arith.constant 0 : i32
    %c0_i32_0 = arith.constant 0 : i32
    return %c0_i32, %arg1 : i32, i32
  }
  func.func @transform_2(%arg0: i32, %arg1: i32) -> (i32, i32) {
    %c0_i32 = arith.constant 0 : i32
    %c0_i32_0 = arith.constant 0 : i32
    return %c0_i32, %arg1 : i32, i32
  }
  func.func @transform_3(%arg0: i32, %arg1: i32) -> (i32, i32) {
    %c0_i32 = arith.constant 0 : i32
    %c0_i32_0 = arith.constant 0 : i32
    return %arg1, %c0_i32 : i32, i32
  }
  func.func @transform_4(%arg0: i32, %arg1: i32) -> (i32, i32) {
    %c0_i32 = arith.constant 0 : i32
    %c0_i32_0 = arith.constant 0 : i32
    %c0_i32_1 = arith.constant 0 : i32
    return %c0_i32, %c0_i32_0 : i32, i32
  }
  func.func @transform_5(%arg0: i32, %arg1: i32) -> (i32, i32) {
    %c0_i32 = arith.constant 0 : i32
    %c0_i32_0 = arith.constant 0 : i32
    return %arg0, %c0_i32 : i32, i32
  }
}

</mosaic_0001>

<bundles_post_ra>
// kernel: tpu_custom_call.1
= control target key start
LH: loop header
LB: loop body
LE: loop exit
PB: predicated region body
PF: predicated region fallthrough
CT: control target
= control target key end

     0   :  { %10 = vsyncpa [#allocation4], 0  ;;  %s598_s0 = inlined_call_operand.hbm [shape: f32[16,32], index: 0, kind: input, shape index: {}]   ;;  %s599_s1 = inlined_call_operand.hbm [shape: f32[32,128], index: 1, kind: input, shape index: {}]   ;;  %s600_s2 = inlined_call_operand.hbm [shape: f32[1,128], index: 2, kind: input, shape index: {}]   ;;  %s601_s3 = inlined_call_operand.hbm [shape: f32[128,32], index: 3, kind: input, shape index: {}]   ;;  %s602_s4 = inlined_call_operand.hbm [shape: f32[1,32], index: 4, kind: input, shape index: {}]   ;;  %s603_s5 = inlined_call_operand.hbm [shape: f32[16,32], index: 5, kind: output, shape index: {}]  }
   0x1   :  { %11 = vsyncpa [#allocation7], 0 }
   0x2   :  { %12 = vsyncpa [#allocation10], 0 }
   0x3   :  { %13 = vsyncpa [#allocation5], 0  ;;  %s460_s18 = smov [#allocation6]   ;;  %s461_s20 = smov [#allocation9]  }
   0x4   :  { %s31_s19 = sshll.u32 %s460_s18, 4  ;;  %s53_s21 = sshll.u32 %s461_s20, 4  ;;  %s32_s19 = int_to_ptr.vmem [resolvable:$true] %s31_s19  ;;  %s500_s21 = int_to_ptr.vmem [resolvable:$true] %s53_s21 }
   0x5   :  { %s320_s24 = scalar_lea.hbm %s599_s1, 512 }
   0x6   :  { %p321_p0 = scmp.ne.s32.totalorder %s599_s1, %s320_s24  ;;  %p324_p1 = scmp.lt.u32.totalorder %s320_s24, %s599_s1 }
   0x8   :  { %p326_p2 = pnand %p324_p1, %p321_p0 }
   0xa   :  { %329 = shalt.err (!%p326_p2)
}
   0xb   :  { %s330_s29 = scalar_lea.vmem %s32_s19, 512  ;;  %p335_p4 = scmp.lt.s32.totalorder %s32_s19, %s32_s19 }
   0xc   :  { %p331_p3 = scmp.ne.s32.totalorder %s32_s19, %s330_s29  ;;  %p336_p5 = scmp.lt.s32.totalorder %s330_s29, %s330_s29 }
   0xe   :  { %p337_p6 = por %p336_p5, %p335_p4 }
  0x10   :  { %p338_p7 = pnand %p337_p6, %p331_p3 }
  0x12   :  { %341 = shalt.err (!%p338_p7)
}
  0x13   :  { %s462_s30 = smov 128   ;;  %s463_s6 = smov 8  }
  0x14   :  { %37 = dma.hbm_to_vmem [thread:$0]  %s599_s1, 512, %s32_s19, [#allocation7], %s462_s30, %s462_s30, %s463_s6  }
  0x15   :  { %s342_s11 = scalar_lea.hbm %s601_s3, 2048 }
  0x16   :  { %p343_p8 = scmp.ne.s32.totalorder %s601_s3, %s342_s11  ;;  %p346_p9 = scmp.lt.u32.totalorder %s342_s11, %s601_s3 }
  0x18   :  { %p348_p10 = pnand %p346_p9, %p343_p8 }
  0x1a   :  { %351 = shalt.err (!%p348_p10)
}
  0x1b   :  { %s352_s16 = scalar_lea.vmem %s500_s21, 2048  ;;  %p357_p12 = scmp.lt.s32.totalorder %s500_s21, %s500_s21 }
  0x1c   :  { %p353_p11 = scmp.ne.s32.totalorder %s500_s21, %s352_s16  ;;  %p358_p13 = scmp.lt.s32.totalorder %s352_s16, %s352_s16 }
  0x1e   :  { %p359_p0 = por %p358_p13, %p357_p12 }
  0x20   :  { %p360_p1 = pnand %p359_p0, %p353_p11 }
  0x22   :  { %363 = shalt.err (!%p360_p1)
}
  0x23   :  { %59 = dma.hbm_to_vmem [thread:$0]  %s601_s3, 2048, %s500_s21, [#allocation10], %s462_s30, %s462_s30, %s463_s6  }
  0x24   :  { %s464_s18 = smov [#allocation3]   ;;  %s465_s20 = smov [#allocation8]  }
  0x25   :  { %s19_s19 = sshll.u32 %s464_s18, 4  ;;  %s44_s22 = sshll.u32 %s465_s20, 4  ;;  %s20_s19 = int_to_ptr.vmem [resolvable:$true] %s19_s19  ;;  %s45_s22 = int_to_ptr.vmem [resolvable:$true] %s44_s22 }
  0x26   :  { %s364_s25 = scalar_lea.hbm %s598_s0, 256 }
  0x27   :  { %p365_p2 = scmp.ne.s32.totalorder %s598_s0, %s364_s25  ;;  %p368_p3 = scmp.lt.u32.totalorder %s364_s25, %s598_s0 }
  0x29   :  { %p370_p4 = pnand %p368_p3, %p365_p2 }
  0x2b   :  { %373 = shalt.err (!%p370_p4)
}
  0x2c   :  { %s374_s3 = scalar_lea.vmem %s20_s19, 256  ;;  %p379_p6 = scmp.lt.s32.totalorder %s20_s19, %s20_s19 }
  0x2d   :  { %p375_p5 = scmp.ne.s32.totalorder %s20_s19, %s374_s3  ;;  %p380_p7 = scmp.lt.s32.totalorder %s374_s3, %s374_s3 }
  0x2f   :  { %p381_p8 = por %p380_p7, %p379_p6 }
  0x31   :  { %p382_p9 = pnand %p381_p8, %p375_p5 }
  0x33   :  { %385 = shalt.err (!%p382_p9)
}
  0x34   :  { %25 = dma.hbm_to_vmem [thread:$0]  %s598_s0, 256, %s20_s19, [#allocation4], %s462_s30, %s462_s30, %s463_s6  }
  0x35   :  { %s386_s10 = scalar_lea.hbm %s600_s2, 16 }
  0x36   :  { %p387_p10 = scmp.ne.s32.totalorder %s600_s2, %s386_s10  ;;  %p390_p11 = scmp.lt.u32.totalorder %s386_s10, %s600_s2 }
  0x38   :  { %p392_p12 = pnand %p390_p11, %p387_p10 }
  0x3a   :  { %395 = shalt.err (!%p392_p12)
}
  0x3b   :  { %s396_s15 = scalar_lea.vmem %s45_s22, 16  ;;  %s400_s16 = scalar_lea.vmem %s45_s22, 32 }
  0x3c   :  { %p397_p13 = scmp.ne.s32.totalorder %s45_s22, %s396_s15  ;;  %p401_p0 = scmp.lt.s32.totalorder %s45_s22, %s45_s22 }
  0x3d   :  { %p402_p1 = scmp.lt.s32.totalorder %s400_s16, %s396_s15 }
  0x3f   :  { %p403_p2 = por %p402_p1, %p401_p0 }
  0x41   :  { %p404_p3 = pnand %p403_p2, %p397_p13 }
  0x43   :  { %407 = shalt.err (!%p404_p3)
}
  0x44   :  { %47 = dma.hbm_to_vmem [thread:$0]  %s600_s2, 16, %s45_s22, [#allocation7]  }
  0x45   :  { %s466_s17 = smov [#allocation11]   ;;  %s408_s23 = scalar_lea.hbm %s602_s4, 16 }
  0x46   :  { %s66_s18 = sshll.u32 %s466_s17, 4  ;;  %p409_p4 = scmp.ne.s32.totalorder %s602_s4, %s408_s23  ;;  %s67_s18 = int_to_ptr.vmem [resolvable:$true] %s66_s18 }
  0x47   :  { %p412_p5 = scmp.lt.u32.totalorder %s408_s23, %s602_s4 }
  0x49   :  { %p414_p6 = pnand %p412_p5, %p409_p4 }
  0x4b   :  { %417 = shalt.err (!%p414_p6)
}
  0x4c   :  { %s418_s28 = scalar_lea.vmem %s67_s18, 16  ;;  %s422_s2 = scalar_lea.vmem %s67_s18, 32 }
  0x4d   :  { %p419_p7 = scmp.ne.s32.totalorder %s67_s18, %s418_s28  ;;  %p423_p8 = scmp.lt.s32.totalorder %s67_s18, %s67_s18 }
  0x4e   :  { %p424_p9 = scmp.lt.s32.totalorder %s422_s2, %s418_s28 }
  0x50   :  { %p425_p10 = por %p424_p9, %p423_p8 }
  0x52   :  { %p426_p11 = pnand %p425_p10, %p419_p7 }
  0x54   :  { %429 = shalt.err (!%p426_p11)
}
  0x55   :  { %69 = dma.hbm_to_vmem [thread:$0]  %s602_s4, 16, %s67_s18, [#allocation10]  }
  0x56   :  { %452 = dma.done.wait [#allocation4], 256  }
  0x57   :  { %453 = vsyncadd [#allocation4], 4294967040 }
  0x58   :  { %454 = dma.done.wait [#allocation7], 528  }
  0x59   :  { %455 = vsyncadd [#allocation7], 4294966768 }
  0x5a   :  { %456 = dma.done.wait [#allocation10], 2064  }
  0x5b   :  { %457 = vsyncadd [#allocation10], 4294965232  ;;  %vm90_vm0 = vcmask 261120   ;;  %v467_v0 = vmov 0.0   ;;  %vm468_vm1 = vmmov 0   ;;  %v96_v1 = vld [vmem:[#allocation6] sm:$0xff] }
  0x5c   :  { %278 = vmatprep.subr.bf16.mxu0 %v467_v0  ;;  %282 = vmatprep.mubr.msk.bf16.mxu0 %vm468_vm1, %v467_v0  ;;  %91 = vst.msk [vmem:[#allocation2] sm:$0xff] %vm90_vm0, %v467_v0  ;;  %92 = vst.msk [vmem:[#allocation2 + $0x8] sm:$0xff] %vm90_vm0, %v467_v0  ;;  %v97_v2 = vld [vmem:[#allocation6 + $0x8] sm:$0xff]  ;;  %v98_v3 = vld [vmem:[#allocation6 + $0x10] sm:$0xff]  ;;  %s469_s4 = smov [#allocation12]  }
  0x5d   :  { %286 = vmatprep.subr.bf16.mxu1 %v467_v0  ;;  %302 = vmatprep.mubr.msk.bf16.mxu1 %vm468_vm1, %v467_v0  ;;  %v100_v4 = vpack.c.bf16 %v97_v2, %v96_v1  ;;  %v99_v5 = vld [vmem:[#allocation6 + $0x18] sm:$0xff]  ;;  %v157_v6 = vld [vmem:[#allocation9] sm:$0xff]  ;;  %v158_v7 = vld [vmem:[#allocation9 + $0x8] sm:$0xff]  ;;  %s249_s3 = sshll.u32 %s469_s4, 4  ;;  %s250_s3 = int_to_ptr.vmem [resolvable:$true] %s249_s3 }
  0x5e   :  { %v159_v8 = vld [vmem:[#allocation9 + $0x10] sm:$0xff]  ;;  %v101_v9 = vpack.c.bf16 %v99_v5, %v98_v3  ;;  %v173_v12 = vpack.c.bf16 %v158_v7, %v157_v6  ;;  %v160_v13 = vld [vmem:[#allocation9 + $0x18] sm:$0xff]  ;;  %v161_v16 = vld [vmem:[#allocation9 + $0x20] sm:$0xff]  ;;  %s430_s21 = scalar_lea.vmem %s250_s3, 256  ;;  %p435_p13 = scmp.lt.s32.totalorder %s250_s3, %s250_s3 }
  0x5f   :  { %279 = vmatpush3.bf16.msra.mxu0 %v100_v4  ;;  %v93_v10 = vld [vmem:[#allocation3] sm:$0xff]  ;;  %v94_v11 = vld [vmem:[#allocation3 + $0x8] sm:$0xff]  ;;  %v174_v14 = vpack.c.bf16 %v160_v13, %v159_v8  ;;  %v165_v22 = vld [vmem:[#allocation9 + $0x40] sm:$0xff]  ;;  %p431_p12 = scmp.ne.s32.totalorder %s250_s3, %s430_s21  ;;  %p436_p0 = scmp.lt.s32.totalorder %s430_s21, %s430_s21 }
  0x60   :  { %280 = vmatprep.subr.bf16.mxu0 %v467_v0  ;;  %287 = vmatpush3.bf16.msra.mxu1 %v173_v12  ;;  %v95_v15 = vpack.c.bf16 %v94_v11, %v93_v10  ;;  %v162_v17 = vld [vmem:[#allocation9 + $0x28] sm:$0xff]  ;;  %v163_v19 = vld [vmem:[#allocation9 + $0x30] sm:$0xff]  ;;  %v164_v20 = vld [vmem:[#allocation9 + $0x38] sm:$0xff] }
  0x61   :  { %288 = vmatprep.subr.bf16.mxu1 %v467_v0  ;;  %v175_v18 = vpack.c.bf16 %v162_v17, %v161_v16  ;;  %v176_v21 = vpack.c.bf16 %v164_v20, %v163_v19  ;;  %v166_v23 = vld [vmem:[#allocation9 + $0x48] sm:$0xff]  ;;  %v167_v25 = vld [vmem:[#allocation9 + $0x50] sm:$0xff]  ;;  %v168_v26 = vld [vmem:[#allocation9 + $0x58] sm:$0xff]  ;;  %p437_p1 = por %p436_p0, %p435_p13 }
  0x62   :  { %v177_v24 = vpack.c.bf16 %v166_v23, %v165_v22  ;;  %v178_v27 = vpack.c.bf16 %v168_v26, %v167_v25  ;;  %v169_v28 = vld [vmem:[#allocation9 + $0x60] sm:$0xff]  ;;  %v170_v29 = vld [vmem:[#allocation9 + $0x68] sm:$0xff]  ;;  %v171_v31 = vld [vmem:[#allocation9 + $0x70] sm:$0xff] }
  0x63   :  { %281 = vmatpush3.bf16.msra.mxu0 %v101_v9  ;;  %v179_v30 = vpack.c.bf16 %v170_v29, %v169_v28  ;;  %v172_v32 = vld [vmem:[#allocation9 + $0x78] sm:$0xff]  ;;  %v182_v46 = vld [vmem:[#allocation2 + $0x8] sm:$0xff]  ;;  %v265_v52 = vld [vmem:[#allocation11] ss:$0 sm:$0xff]  ;;  %p438_p2 = pnand %p437_p1, %p431_p12 }
  0x64   :  { %289 = vmatpush3.bf16.msra.mxu1 %v174_v14  ;;  %v180_v33 = vpack.c.bf16 %v172_v32, %v171_v31  ;;  %v263_v34 = vld [vmem:[#allocation8] ss:$0 sm:$0xff] }
  0x65   :  { %290 = vmatprep.subr.bf16.mxu1 %v467_v0  ;;  %v181_v44 = vld [vmem:[#allocation2] sm:$0xff] }
  0x66   :  { %283 = vmatmul.mubr.msk.bf16.vlgmr.msra.gmra.mrb[0].mxu0 %vm90_vm0, %v95_v15 }
  0x68   :  { %291 = vmatpush3.bf16.msra.mxu1 %v175_v18 }
  0x69   :  { %292 = vmatprep.subr.bf16.mxu1 %v467_v0 }
  0x6c   :  { %293 = vmatpush3.bf16.msra.mxu1 %v176_v21 }
  0x6d   :  { %294 = vmatprep.subr.bf16.mxu1 %v467_v0 }
  0x70   :  { %295 = vmatpush3.bf16.msra.mxu1 %v177_v24 }
  0x71   :  { %296 = vmatprep.subr.bf16.mxu1 %v467_v0 }
  0x74   :  { %297 = vmatpush3.bf16.msra.mxu1 %v178_v27 }
  0x75   :  { %298 = vmatprep.subr.bf16.mxu1 %v467_v0 }
  0x78   :  { %299 = vmatpush3.bf16.msra.mxu1 %v179_v30 }
  0x79   :  { %300 = vmatprep.subr.bf16.mxu1 %v467_v0 }
  0x7c   :  { %301 = vmatpush3.bf16.msra.mxu1 %v180_v33 }
 0x139   :  { %v147_v35 = vpop.f32.mrb[0].mxu0 }
 0x13a   :  { %v148_v36 = vadd.f32 %v263_v34, %v147_v35  ;;  %v284_v37 = vpop.f32.mrb[1].mxu0 }
 0x13b   :  { %v150_v38 = vpop.f32.mrb[2].mxu0 }
 0x13c   :  { %v151_v39 = vadd.f32 %v263_v34, %v150_v38  ;;  %v285_v40 = vpop.f32.mrb[3].mxu0  ;;  %316 = vtanh.f32 %v148_v36 }
 0x13e   :  { %318 = vtanh.f32 %v151_v39 }
 0x146   :  { %v317_v41 = vpop.eup %316 }
 0x148   :  { %v319_v42 = vpop.eup %318 }
 0x149   :  { %v156_v43 = vpack.c.bf16 %v319_v42, %v317_v41 }
 0x14b   :  { %303 = vmatmul.mubr.bf16.vlgmr.msra.gmra.mrb[0].mxu1 %v156_v43 }
 0x21e   :  { %v217_v45 = vpop.f32.mrb[0].mxu1 }
 0x21f   :  { %v224_v47 = vadd.f32 %v217_v45, %v181_v44  ;;  %v304_v48 = vpop.f32.mrb[1].mxu1 }
 0x220   :  { %v220_v49 = vpop.f32.mrb[2].mxu1 }
 0x221   :  { %226 = vst.msk [vmem:[#allocation2] sm:$0xff] %vm90_vm0, %v224_v47  ;;  %v225_v50 = vadd.f32 %v220_v49, %v182_v46  ;;  %v305_v51 = vpop.f32.mrb[3].mxu1 }
 0x223   :  { %227 = vst.msk [vmem:[#allocation2 + $0x8] sm:$0xff] %vm90_vm0, %v225_v50 }
 0x228   :  { %v231_v53 = vld [vmem:[#allocation2] sm:$0xff] }
 0x229   :  { %v240_v54 = vadd.f32 %v265_v52, %v231_v53 }
 0x22a   :  { %v232_v55 = vld [vmem:[#allocation2 + $0x8] sm:$0xff] }
 0x22b   :  { %v241_v56 = vadd.f32 %v265_v52, %v232_v55  ;;  %242 = vst.msk [vmem:[#allocation12] sm:$0xff] %vm90_vm0, %v240_v54 }
 0x22d   :  { %243 = vst.msk [vmem:[#allocation12 + $0x8] sm:$0xff] %vm90_vm0, %v241_v56 }
 0x22e   :  { %441 = shalt.err (!%p438_p2)
}
 0x22f   :  { %s442_s9 = scalar_lea.hbm %s603_s5, 256 }
 0x230   :  { %p443_p3 = scmp.ne.s32.totalorder %s603_s5, %s442_s9  ;;  %p446_p4 = scmp.lt.u32.totalorder %s442_s9, %s603_s5 }
 0x232   :  { %p448_p5 = pnand %p446_p4, %p443_p3 }
 0x234   :  { %451 = shalt.err (!%p448_p5)
}
 0x235   :  { %255 = dma.vmem_to_hbm [thread:$0]  %s250_s3, 256, %s603_s5, [#allocation5], %s462_s30, %s462_s30, %s463_s6  }
 0x236   :  { %458 = dma.done.wait [#allocation5], 256  }
 0x237   :  { %459 = vsyncadd [#allocation5], 4294967040 }
 0x238   :  { %259 = vsyncpa [#allocation4], 1 }
 0x239   :  { %260 = vsyncpa [#allocation7], 1 }
 0x23a   :  { %261 = vsyncpa [#allocation10], 1 }
 0x23b   :  { %262 = vsyncpa [#allocation5], 1 }

</bundles_post_ra>
